<compile_context>
chip_gen: v7x
topology: tpu7x:2x2x1
jax: 0.10.0
libtpu: 0.0.40
codegen_flags: <defaults>
</compile_context>

<pallas_src>
import functools

import jax
import jax.numpy as jnp
from jax import lax
from jax.experimental import pallas as pl
from jax.experimental.pallas import tpu as pltpu


def _round_up(x, m):
    return ((x + m - 1) // m) * m


def _attention_flash_kernel(xq_ref, xk_ref, wq_ref, bq_ref, wkv_ref, bkv_ref, gamma_ref,
                            o_ref,
                            q_sc, m_sc, l_sc, acc_sc,
                            *, mxu_dtype, seq_len, tile, approx_reciprocal):
    ki = pl.program_id(2)
    nk = pl.num_programs(2)
    C = xk_ref.shape[1]

    @pl.when(ki == 0)
    def _init():
        # Query projection for this query tile: one (C, C) @ (C, T) MXU matmul + bias.
        xq = xq_ref[0].astype(mxu_dtype)                                      # (C, T)
        q = jnp.dot(wq_ref[...].astype(mxu_dtype), xq,
                    preferred_element_type=jnp.float32) + bq_ref[...]         # (C, T) f32
        q_sc[...] = q.astype(q_sc.dtype)                                      # stored in MXU dtype
        m_sc[...] = jnp.full_like(m_sc, -1e30)   # finite init avoids -inf - -inf NaNs
        l_sc[...] = jnp.zeros_like(l_sc)
        acc_sc[...] = jnp.zeros_like(acc_sc)

    # Fused K/V 1x1-conv projection for this key tile: one (2C, C) @ (C, T) matmul.
    xk = xk_ref[0].astype(mxu_dtype)                                          # (C, T)
    kv = jnp.dot(wkv_ref[...].astype(mxu_dtype), xk,
                 preferred_element_type=jnp.float32) + bkv_ref[...]           # (2C, T) f32
    k = kv[:C, :]                                                             # (C, T)
    v = kv[C:, :]                                                             # (C, T)

    # energy^T[j, i] = sum_c k[c, j] * q[c, i]  (== torch energy[i, j]).
    # Contracting the channel axis of both operands keeps everything in its natural
    # layout (no transpose) and puts the softmax reduction on axis 0.
    e = lax.dot_general(k.astype(mxu_dtype), q_sc[...],
                        (((0,), (0,)), ((), ())),
                        preferred_element_type=jnp.float32)                   # (T, T)

    if seq_len % tile != 0:
        # Mask key positions beyond the true sequence length (only the last key tile
        # can be partially padded; it always contains >= 1 valid key by construction).
        key_pos = ki * tile + lax.broadcasted_iota(jnp.int32, e.shape, 0)
        e = jnp.where(key_pos < seq_len, e, -1e30)

    # Online (flash) softmax over the key axis (axis 0 of the transposed energy).
    m_prev = m_sc[...]                                                        # (1, T)
    m_new = jnp.maximum(m_prev, jnp.max(e, axis=0, keepdims=True))            # (1, T)
    alpha = jnp.exp(m_prev - m_new)                                           # (1, T)
    p = jnp.exp(e - m_new)                                                    # (T, T) f32
    l_sc[...] = alpha * l_sc[...] + jnp.sum(p, axis=0, keepdims=True)
    # value_attention tile: acc[c, i] += sum_j v[c, j] * p[j, i]
    acc_sc[...] = alpha * acc_sc[...] + jnp.dot(v.astype(mxu_dtype), p.astype(mxu_dtype),
                                                preferred_element_type=jnp.float32)
    m_sc[...] = m_new

    @pl.when(ki == nk - 1)
    def _finalize():
        # Deferred softmax normalization.  After max subtraction the denominator is >= 1,
        # so the approximate EUP reciprocal is safe (and moves work off the VPU).
        inv_l = pl.reciprocal(l_sc[...], approx=approx_reciprocal)            # (1, T)
        va = acc_sc[...] * inv_l                                              # (C, T)
        o_ref[0] = (xq_ref[0] + gamma_ref[0, 0] * va).astype(o_ref.dtype)


def attention_block(x_ncl, wq, bq, wk, bk, wv, bv, gamma, *,
                    mxu_dtype=jnp.bfloat16, tile=256, approx_reciprocal=True):
    """Forward pass of AttentionBlock (NCL layout, no wrapper transposes).

    x_ncl    : (B, C, L) activations, torch NCL layout.
    wq/wk/wv : (C, C) Conv1d weights, torch (C_out, C_in) layout (== weight[:, :, 0]).
    bq/bk/bv : (C,) biases.   gamma: scalar.
    mxu_dtype: dtype fed to the MXU (f32 accumulation either way).  bfloat16 is the fast
               path on ALL TPU generations (v5e's MXU is natively bf16); use float32 when
               bit-closeness to the f32 reference matters.
    tile     : query/key tile length (multiple of 128); clamped to round_up(L, 128).
    approx_reciprocal: use the approximate EUP reciprocal for the softmax denominator.
    Returns (B, C, L) float32.
    """
    B, C, L = x_ncl.shape
    assert C % 8 == 0, "C must be a multiple of 8 (sublane-aligned q/k/v slices); pad planes."
    assert tile % 128 == 0 and tile > 0, "tile must be a positive multiple of 128"

    T = min(int(tile), _round_up(L, 128))     # multiple of 128 -> lane-dense blocks/stores
    Lp = _round_up(L, T)                      # padded length; last key tile has >=1 valid key
    n_q = Lp // T
    n_k = Lp // T

    x = x_ncl.astype(jnp.float32)
    if Lp != L:
        x = jnp.pad(x, ((0, 0), (0, 0), (0, Lp - L)))

    # Host-side packing of the 1x1-conv parameters.
    w_q = wq.astype(jnp.float32)                                             # (C, C)
    b_q = bq.reshape(C, 1).astype(jnp.float32)                               # (C, 1)
    w_kv = jnp.concatenate([wk, wv], axis=0).astype(jnp.float32)             # (2C, C)
    b_kv = jnp.concatenate([bk, bv], axis=0).reshape(2 * C, 1).astype(jnp.float32)
    g = jnp.asarray(gamma, jnp.float32).reshape(1, 1)

    # Explicit scoped-VMEM budget from the actual per-step buffers (double-buffered
    # input/output tiles + resident weights + scratch + transient matmul intermediates),
    # with 2x headroom, floored at 32 MiB and capped below v7x's 64 MiB physical VMEM.
    f32b = 4
    mxub = jnp.dtype(mxu_dtype).itemsize
    blk = C * T * f32b
    est = (2 * 3 * blk                                # xq, xk, out blocks (double-buffered)
           + 2 * ((3 * C * C + 3 * C) * f32b)         # W_q, W_kv, biases (double-buffered)
           + C * T * mxub + C * T * f32b              # q / acc scratch
           + 2 * 8 * T * f32b                         # m / l scratch (8-sublane padded)
           + 2 * C * T * f32b                         # kv projection intermediate
           + T * T * (2 * f32b + mxub))               # energy / p (+ MXU-dtype copy)
    vmem_limit = int(min(max(2 * est, 32 * 2 ** 20), 60 * 2 ** 20))

    kernel = functools.partial(_attention_flash_kernel, mxu_dtype=mxu_dtype,
                               seq_len=L, tile=T, approx_reciprocal=approx_reciprocal)

    out = pl.pallas_call(
        kernel,
        out_shape=jax.ShapeDtypeStruct((B, C, Lp), jnp.float32),
        grid_spec=pltpu.PrefetchScalarGridSpec(
            num_scalar_prefetch=0,
            grid=(B, n_q, n_k),
            in_specs=[
                pl.BlockSpec((1, C, T), lambda b, qi, ki: (b, 0, qi)),   # x, query tile
                pl.BlockSpec((1, C, T), lambda b, qi, ki: (b, 0, ki)),   # x, key tile
                pl.BlockSpec((C, C), lambda b, qi, ki: (0, 0)),          # W_q
                pl.BlockSpec((C, 1), lambda b, qi, ki: (0, 0)),          # b_q
                pl.BlockSpec((2 * C, C), lambda b, qi, ki: (0, 0)),      # fused W_kv
                pl.BlockSpec((2 * C, 1), lambda b, qi, ki: (0, 0)),      # fused b_kv
                pl.BlockSpec(memory_space=pltpu.MemorySpace.SMEM),       # gamma (scalar path)
            ],
            out_specs=pl.BlockSpec((1, C, T), lambda b, qi, ki: (b, 0, qi)),
            scratch_shapes=[
                pltpu.VMEM((C, T), mxu_dtype),      # q tile (stored in MXU dtype)
                pltpu.VMEM((1, T), jnp.float32),    # running max
                pltpu.VMEM((1, T), jnp.float32),    # running softmax denominator
                pltpu.VMEM((C, T), jnp.float32),    # output accumulator
            ],
        ),
        compiler_params=pltpu.CompilerParams(
            dimension_semantics=("parallel", "parallel", "arbitrary"),
            vmem_limit_bytes=vmem_limit,
        ),
    )(x, x, w_q, b_q, w_kv, b_kv, g)

    return out[:, :, :L] if Lp != L else out


def _reference(x_ncl, wq, bq, wk, bk, wv, bv, gamma):
    # Pure-JAX reference mirroring the torch forward exactly (NCL layout,
    # torch (C_out, C_in) weight convention).
    def conv1x1(x, w, b):                      # x: (B,C,L), w: (C_out, C_in)
        return jnp.einsum('oc,bcl->bol', w, x) + b[None, :, None]
    q = jnp.transpose(conv1x1(x_ncl, wq, bq), (0, 2, 1))    # (B, L, C)
    k = conv1x1(x_ncl, wk, bk)                              # (B, C, L)
    energy = jnp.einsum('blc,bcm->blm', q, k)               # (B, L, L)
    att = jax.nn.softmax(energy, axis=-1)
    v = conv1x1(x_ncl, wv, bv)                              # (B, C, L)
    va = jnp.einsum('bcl,bml->bcm', v, att)                 # (B, C, L)
    return x_ncl + gamma * va


if __name__ == "__main__":
    key = jax.random.PRNGKey(0)
    kx, kq, kk, kv, kbq, kbk, kbv, kx2 = jax.random.split(key, 8)

    # Small, module-consistent shapes: batch=2, planes(C)=32, sequence length=16.
    B, C, L = 2, 32, 16
    x = jax.random.normal(kx, (B, C, L), dtype=jnp.float32)

    # Deterministic parameter init, torch Conv1d (C_out, C_in, 1) -> (C_out, C_in).
    scale = 1.0 / jnp.sqrt(jnp.float32(C))
    wq = (jax.random.uniform(kq, (C, C), minval=-1.0, maxval=1.0) * scale).astype(jnp.float32)
    wk = (jax.random.uniform(kk, (C, C), minval=-1.0, maxval=1.0) * scale).astype(jnp.float32)
    wv = (jax.random.uniform(kv, (C, C), minval=-1.0, maxval=1.0) * scale).astype(jnp.float32)
    bq = (jax.random.uniform(kbq, (C,), minval=-1.0, maxval=1.0) * scale).astype(jnp.float32)
    bk = (jax.random.uniform(kbk, (C,), minval=-1.0, maxval=1.0) * scale).astype(jnp.float32)
    bv = (jax.random.uniform(kbv, (C,), minval=-1.0, maxval=1.0) * scale).astype(jnp.float32)
    # NOTE: torch init has gamma = 0 (output == input); use a nonzero deterministic
    # value so the attention path is actually exercised.
    gamma = jnp.float32(0.5)

    ref = _reference(x, wq, bq, wk, bk, wv, bv, gamma)

    # 1) Accuracy path: f32 MXU operands + exact reciprocal -- strict tolerance.
    out = attention_block(x, wq, bq, wk, bk, wv, bv, gamma,
                          mxu_dtype=jnp.float32, approx_reciprocal=False)
    out = jax.block_until_ready(out)
    assert out.shape == (B, C, L)
    assert jnp.allclose(out, ref, atol=1e-4, rtol=1e-4), "f32 kernel mismatch vs reference"

    # 2) Default fast path: bf16-at-the-MXU-boundary (all generations) + approx EUP
    #    reciprocal.  f32 accumulation / softmax, so tolerance is loose by construction.
    out_fast = jax.block_until_ready(attention_block(x, wq, bq, wk, bk, wv, bv, gamma))
    assert jnp.allclose(out_fast, ref, atol=1e-1, rtol=1e-1), "bf16 kernel mismatch vs reference"

    # 3) Multi-key-tile + tail-masking path: L not a multiple of the tile exercises the
    #    online-softmax accumulation across key tiles and the padded-key mask.
    B2, L2 = 1, 200
    x2 = jax.random.normal(kx2, (B2, C, L2), dtype=jnp.float32)
    ref2 = _reference(x2, wq, bq, wk, bk, wv, bv, gamma)
    out2 = attention_block(x2, wq, bq, wk, bk, wv, bv, gamma,
                           mxu_dtype=jnp.float32, approx_reciprocal=False, tile=128)
    out2 = jax.block_until_ready(out2)
    assert out2.shape == (B2, C, L2)
    assert jnp.allclose(out2, ref2, atol=1e-4, rtol=1e-4), "tiled kernel mismatch vs reference"

    print("KERNEL_OK")
</pallas_src>

<mosaic_0001>
module attributes {stable_mosaic.version = 11 : i64} {
  func.func @_attention_flash_kernel(%arg0: i32, %arg1: i32, %arg2: i32, %arg3: memref<1x32x128xf32, #tpu.memory_space<vmem>>, %arg4: memref<1x32x128xf32, #tpu.memory_space<vmem>>, %arg5: memref<32x32xf32, #tpu.memory_space<vmem>>, %arg6: memref<32x1xf32, #tpu.memory_space<vmem>>, %arg7: memref<64x32xf32, #tpu.memory_space<vmem>>, %arg8: memref<64x1xf32, #tpu.memory_space<vmem>>, %arg9: memref<1x1xf32, #tpu.memory_space<smem>>, %arg10: memref<1x32x128xf32, #tpu.memory_space<vmem>>, %arg11: memref<32x128xf32, #tpu.memory_space<vmem>>, %arg12: memref<1x128xf32, #tpu.memory_space<vmem>>, %arg13: memref<1x128xf32, #tpu.memory_space<vmem>>, %arg14: memref<32x128xf32, #tpu.memory_space<vmem>>) attributes {dimension_semantics = [#tpu.dimension_semantics<parallel>, #tpu.dimension_semantics<parallel>, #tpu.dimension_semantics<arbitrary>], iteration_bounds = array<i64: 2, 1, 1>, scalar_prefetch = 0 : i64, scratch_operands = 4 : i64, tpu.core_type = #tpu.core_type<tc>, window_params = [{transform_indices = @transform_0, window_bounds = array<i64: 1, 32, 128>}, {transform_indices = @transform_1, window_bounds = array<i64: 1, 32, 128>}, {pipeline_mode = #tpu.pipeline_mode<synchronous>, transform_indices = @transform_2, window_bounds = array<i64: 32, 32>}, {pipeline_mode = #tpu.pipeline_mode<synchronous>, transform_indices = @transform_3, window_bounds = array<i64: 32, 1>}, {pipeline_mode = #tpu.pipeline_mode<synchronous>, transform_indices = @transform_4, window_bounds = array<i64: 64, 32>}, {pipeline_mode = #tpu.pipeline_mode<synchronous>, transform_indices = @transform_5, window_bounds = array<i64: 64, 1>}, {transform_indices = @transform_6, window_bounds = array<i64: 1, 1>}, {transform_indices = @transform_7, window_bounds = array<i64: 1, 32, 128>}]} {
    %c0_i32 = arith.constant 0 : i32
    %0 = arith.cmpi eq, %arg2, %c0_i32 : i32
    %1 = arith.extui %0 : i1 to i32
    %c0_i32_0 = arith.constant 0 : i32
    %2 = arith.cmpi ne, %1, %c0_i32_0 : i32
    scf.if %2 {
      %c0_28 = arith.constant 0 : index
      %c0_29 = arith.constant 0 : index
      %c0_30 = arith.constant 0 : index
      %47 = vector.load %arg3[%c0_28, %c0_29, %c0_30] : memref<1x32x128xf32, #tpu.memory_space<vmem>>, vector<1x32x128xf32>
      %48 = vector.shape_cast %47 : vector<1x32x128xf32> to vector<32x128xf32>
      %c0_31 = arith.constant 0 : index
      %c0_32 = arith.constant 0 : index
      %49 = vector.load %arg5[%c0_31, %c0_32] : memref<32x32xf32, #tpu.memory_space<vmem>>, vector<32x32xf32>
      %cst_33 = arith.constant dense<0.000000e+00> : vector<32x128xf32>
      %50 = tpu.matmul %49, %48, %cst_33 {dimension_numbers = #tpu.dot_dimension_numbers<[1], [0], [0], [1], [0, 0, 1, 1], [], []>} : vector<32x32xf32>, vector<32x128xf32>, vector<32x128xf32> -> vector<32x128xf32>
      %c0_34 = arith.constant 0 : index
      %c0_35 = arith.constant 0 : index
      %51 = vector.load %arg6[%c0_34, %c0_35] : memref<32x1xf32, #tpu.memory_space<vmem>>, vector<32x1xf32>
      %52 = vector.broadcast %51 : vector<32x1xf32> to vector<32x128xf32>
      %53 = arith.addf %50, %52 : vector<32x128xf32>
      %c0_36 = arith.constant 0 : index
      %c0_37 = arith.constant 0 : index
      %54 = vector.load %arg11[%c0_36, %c0_37] : memref<32x128xf32, #tpu.memory_space<vmem>>, vector<32x128xf32>
      tpu.vector_store %arg11[%c0_36, %c0_37], %53 {strides = array<i32>} : memref<32x128xf32, #tpu.memory_space<vmem>>, vector<32x128xf32>,
      %cst_38 = arith.constant -1.000000e+30 : f32
      %55 = vector.broadcast %cst_38 : f32 to vector<1x128xf32>
      %c0_39 = arith.constant 0 : index
      %c0_40 = arith.constant 0 : index
      %56 = vector.load %arg12[%c0_39, %c0_40] : memref<1x128xf32, #tpu.memory_space<vmem>>, vector<1x128xf32>
      tpu.vector_store %arg12[%c0_39, %c0_40], %55 {strides = array<i32>} : memref<1x128xf32, #tpu.memory_space<vmem>>, vector<1x128xf32>,
      %cst_41 = arith.constant 0.000000e+00 : f32
      %57 = vector.broadcast %cst_41 : f32 to vector<1x128xf32>
      %c0_42 = arith.constant 0 : index
      %c0_43 = arith.constant 0 : index
      %58 = vector.load %arg13[%c0_42, %c0_43] : memref<1x128xf32, #tpu.memory_space<vmem>>, vector<1x128xf32>
      tpu.vector_store %arg13[%c0_42, %c0_43], %57 {strides = array<i32>} : memref<1x128xf32, #tpu.memory_space<vmem>>, vector<1x128xf32>,
      %cst_44 = arith.constant 0.000000e+00 : f32
      %59 = vector.broadcast %cst_44 : f32 to vector<32x128xf32>
      %c0_45 = arith.constant 0 : index
      %c0_46 = arith.constant 0 : index
      %60 = vector.load %arg14[%c0_45, %c0_46] : memref<32x128xf32, #tpu.memory_space<vmem>>, vector<32x128xf32>
      tpu.vector_store %arg14[%c0_45, %c0_46], %59 {strides = array<i32>} : memref<32x128xf32, #tpu.memory_space<vmem>>, vector<32x128xf32>,
    } else {
    }
    %c0 = arith.constant 0 : index
    %c0_1 = arith.constant 0 : index
    %c0_2 = arith.constant 0 : index
    %3 = vector.load %arg4[%c0, %c0_1, %c0_2] : memref<1x32x128xf32, #tpu.memory_space<vmem>>, vector<1x32x128xf32>
    %4 = vector.shape_cast %3 : vector<1x32x128xf32> to vector<32x128xf32>
    %c0_3 = arith.constant 0 : index
    %c0_4 = arith.constant 0 : index
    %5 = vector.load %arg7[%c0_3, %c0_4] : memref<64x32xf32, #tpu.memory_space<vmem>>, vector<64x32xf32>
    %cst = arith.constant dense<0.000000e+00> : vector<64x128xf32>
    %6 = tpu.matmul %5, %4, %cst {dimension_numbers = #tpu.dot_dimension_numbers<[1], [0], [0], [1], [0, 0, 1, 1], [], []>} : vector<64x32xf32>, vector<32x128xf32>, vector<64x128xf32> -> vector<64x128xf32>
    %c0_5 = arith.constant 0 : index
    %c0_6 = arith.constant 0 : index
    %7 = vector.load %arg8[%c0_5, %c0_6] : memref<64x1xf32, #tpu.memory_space<vmem>>, vector<64x1xf32>
    %8 = vector.broadcast %7 : vector<64x1xf32> to vector<64x128xf32>
    %9 = arith.addf %6, %8 : vector<64x128xf32>
    %10 = vector.extract_strided_slice %9 {offsets = [0, 0], sizes = [32, 128], strides = [1, 1]} : vector<64x128xf32> to vector<32x128xf32>
    %11 = vector.extract_strided_slice %9 {offsets = [32, 0], sizes = [32, 128], strides = [1, 1]} : vector<64x128xf32> to vector<32x128xf32>
    %c0_7 = arith.constant 0 : index
    %c0_8 = arith.constant 0 : index
    %12 = vector.load %arg11[%c0_7, %c0_8] : memref<32x128xf32, #tpu.memory_space<vmem>>, vector<32x128xf32>
    %cst_9 = arith.constant dense<0.000000e+00> : vector<128x128xf32>
    %13 = tpu.matmul %10, %12, %cst_9 {dimension_numbers = #tpu.dot_dimension_numbers<[0], [0], [1], [1], [0, 1, 1, 1], [], []>} : vector<32x128xf32>, vector<32x128xf32>, vector<128x128xf32> -> vector<128x128xf32>
    %c128_i32 = arith.constant 128 : i32
    %14 = arith.muli %arg2, %c128_i32 : i32
    %15 = tpu.iota {dimensions = array<i32: 0>} : vector<128x128xi32>
    %16 = vector.broadcast %14 : i32 to vector<128x128xi32>
    %17 = arith.addi %16, %15 : vector<128x128xi32>
    %c16_i32 = arith.constant 16 : i32
    %18 = vector.broadcast %c16_i32 : i32 to vector<128x128xi32>
    %19 = arith.cmpi slt, %17, %18 : vector<128x128xi32>
    %cst_10 = arith.constant -1.000000e+30 : f32
    %20 = vector.broadcast %cst_10 : f32 to vector<128x128xf32>
    %21 = arith.select %19, %13, %20 : vector<128x128xi1>, vector<128x128xf32>
    %c0_11 = arith.constant 0 : index
    %c0_12 = arith.constant 0 : index
    %22 = vector.load %arg12[%c0_11, %c0_12] : memref<1x128xf32, #tpu.memory_space<vmem>>, vector<1x128xf32>
    %cst_13 = arith.constant dense<0xFF800000> : vector<128xf32>
    %23 = vector.multi_reduction <maximumf>, %21, %cst_13 [0] : vector<128x128xf32> to vector<128xf32>
    %24 = vector.shape_cast %23 : vector<128xf32> to vector<1x128xf32>
    %25 = arith.maximumf %22, %24 : vector<1x128xf32>
    %26 = arith.subf %22, %25 : vector<1x128xf32>
    %27 = math.exp %26 : vector<1x128xf32>
    %28 = vector.broadcast %25 : vector<1x128xf32> to vector<128x128xf32>
    %29 = arith.subf %21, %28 : vector<128x128xf32>
    %30 = math.exp %29 : vector<128x128xf32>
    %c0_14 = arith.constant 0 : index
    %c0_15 = arith.constant 0 : index
    %31 = vector.load %arg13[%c0_14, %c0_15] : memref<1x128xf32, #tpu.memory_space<vmem>>, vector<1x128xf32>
    %32 = arith.mulf %27, %31 : vector<1x128xf32>
    %cst_16 = arith.constant dense<0.000000e+00> : vector<128xf32>
    %33 = vector.multi_reduction <add>, %30, %cst_16 [0] : vector<128x128xf32> to vector<128xf32>
    %34 = vector.shape_cast %33 : vector<128xf32> to vector<1x128xf32>
    %35 = arith.addf %32, %34 : vector<1x128xf32>
    %c0_17 = arith.constant 0 : index
    %c0_18 = arith.constant 0 : index
    %36 = vector.load %arg13[%c0_17, %c0_18] : memref<1x128xf32, #tpu.memory_space<vmem>>, vector<1x128xf32>
    tpu.vector_store %arg13[%c0_17, %c0_18], %35 {strides = array<i32>} : memref<1x128xf32, #tpu.memory_space<vmem>>, vector<1x128xf32>,
    %c0_19 = arith.constant 0 : index
    %c0_20 = arith.constant 0 : index
    %37 = vector.load %arg14[%c0_19, %c0_20] : memref<32x128xf32, #tpu.memory_space<vmem>>, vector<32x128xf32>
    %38 = vector.broadcast %27 : vector<1x128xf32> to vector<32x128xf32>
    %39 = arith.mulf %38, %37 : vector<32x128xf32>
    %cst_21 = arith.constant dense<0.000000e+00> : vector<32x128xf32>
    %40 = tpu.matmul %11, %30, %cst_21 {dimension_numbers = #tpu.dot_dimension_numbers<[1], [0], [0], [1], [0, 0, 1, 1], [], []>} : vector<32x128xf32>, vector<128x128xf32>, vector<32x128xf32> -> vector<32x128xf32>
    %41 = arith.addf %39, %40 : vector<32x128xf32>
    %c0_22 = arith.constant 0 : index
    %c0_23 = arith.constant 0 : index
    %42 = vector.load %arg14[%c0_22, %c0_23] : memref<32x128xf32, #tpu.memory_space<vmem>>, vector<32x128xf32>
    tpu.vector_store %arg14[%c0_22, %c0_23], %41 {strides = array<i32>} : memref<32x128xf32, #tpu.memory_space<vmem>>, vector<32x128xf32>,
    %c0_24 = arith.constant 0 : index
    %c0_25 = arith.constant 0 : index
    %43 = vector.load %arg12[%c0_24, %c0_25] : memref<1x128xf32, #tpu.memory_space<vmem>>, vector<1x128xf32>
    tpu.vector_store %arg12[%c0_24, %c0_25], %25 {strides = array<i32>} : memref<1x128xf32, #tpu.memory_space<vmem>>, vector<1x128xf32>,
    %c0_i32_26 = arith.constant 0 : i32
    %44 = arith.cmpi eq, %arg2, %c0_i32_26 : i32
    %45 = arith.extui %44 : i1 to i32
    %c0_i32_27 = arith.constant 0 : i32
    %46 = arith.cmpi ne, %45, %c0_i32_27 : i32
    scf.if %46 {
      %c0_28 = arith.constant 0 : index
      %c0_29 = arith.constant 0 : index
      %47 = vector.load %arg13[%c0_28, %c0_29] : memref<1x128xf32, #tpu.memory_space<vmem>>, vector<1x128xf32>
      %48 = tpu.reciprocal %47 : vector<1x128xf32> -> vector<1x128xf32>
      %c0_30 = arith.constant 0 : index
      %c0_31 = arith.constant 0 : index
      %49 = vector.load %arg14[%c0_30, %c0_31] : memref<32x128xf32, #tpu.memory_space<vmem>>, vector<32x128xf32>
      %50 = vector.broadcast %48 : vector<1x128xf32> to vector<32x128xf32>
      %51 = arith.mulf %49, %50 : vector<32x128xf32>
      %c0_32 = arith.constant 0 : index
      %c0_33 = arith.constant 0 : index
      %c0_34 = arith.constant 0 : index
      %52 = vector.load %arg3[%c0_32, %c0_33, %c0_34] : memref<1x32x128xf32, #tpu.memory_space<vmem>>, vector<1x32x128xf32>
      %53 = vector.shape_cast %52 : vector<1x32x128xf32> to vector<32x128xf32>
      %c0_35 = arith.constant 0 : index
      %c0_36 = arith.constant 0 : index
      %54 = memref.load %arg9[%c0_35, %c0_36] : memref<1x1xf32, #tpu.memory_space<smem>>
      %55 = vector.broadcast %54 : f32 to vector<32x128xf32>
      %56 = arith.mulf %55, %51 : vector<32x128xf32>
      %57 = arith.addf %53, %56 : vector<32x128xf32>
      %c0_37 = arith.constant 0 : index
      %c0_38 = arith.constant 0 : index
      %c0_39 = arith.constant 0 : index
      %58 = vector.load %arg10[%c0_37, %c0_38, %c0_39] : memref<1x32x128xf32, #tpu.memory_space<vmem>>, vector<1x32x128xf32>
      %59 = vector.shape_cast %58 : vector<1x32x128xf32> to vector<32x128xf32>
      %60 = vector.shape_cast %57 : vector<32x128xf32> to vector<1x32x128xf32>
      tpu.vector_store %arg10[%c0_37, %c0_38, %c0_39], %60 {strides = array<i32>} : memref<1x32x128xf32, #tpu.memory_space<vmem>>, vector<1x32x128xf32>,
    } else {
    }
    return
  }
  func.func @transform_0(%arg0: i32, %arg1: i32, %arg2: i32) -> (i32, i32, i32) {
    %c0_i32 = arith.constant 0 : i32
    %c0_i32_0 = arith.constant 0 : i32
    return %arg0, %c0_i32, %arg1 : i32, i32, i32
  }
  func.func @transform_1(%arg0: i32, %arg1: i32, %arg2: i32) -> (i32, i32, i32) {
    %c0_i32 = arith.constant 0 : i32
    %c0_i32_0 = arith.constant 0 : i32
    return %arg0, %c0_i32, %arg2 : i32, i32, i32
  }
  func.func @transform_2(%arg0: i32, %arg1: i32, %arg2: i32) -> (i32, i32) {
    %c0_i32 = arith.constant 0 : i32
    %c0_i32_0 = arith.constant 0 : i32
    %c0_i32_1 = arith.constant 0 : i32
    return %c0_i32, %c0_i32_0 : i32, i32
  }
  func.func @transform_3(%arg0: i32, %arg1: i32, %arg2: i32) -> (i32, i32) {
    %c0_i32 = arith.constant 0 : i32
    %c0_i32_0 = arith.constant 0 : i32
    %c0_i32_1 = arith.constant 0 : i32
    return %c0_i32, %c0_i32_0 : i32, i32
  }
  func.func @transform_4(%arg0: i32, %arg1: i32, %arg2: i32) -> (i32, i32) {
    %c0_i32 = arith.constant 0 : i32
    %c0_i32_0 = arith.constant 0 : i32
    %c0_i32_1 = arith.constant 0 : i32
    return %c0_i32, %c0_i32_0 : i32, i32
  }
  func.func @transform_5(%arg0: i32, %arg1: i32, %arg2: i32) -> (i32, i32) {
    %c0_i32 = arith.constant 0 : i32
    %c0_i32_0 = arith.constant 0 : i32
    %c0_i32_1 = arith.constant 0 : i32
    return %c0_i32, %c0_i32_0 : i32, i32
  }
  func.func @transform_6(%arg0: i32, %arg1: i32, %arg2: i32) -> (i32, i32) {
    %c0_i32 = arith.constant 0 : i32
    %c0_i32_0 = arith.constant 0 : i32
    %c0_i32_1 = arith.constant 0 : i32
    return %c0_i32, %c0_i32_0 : i32, i32
  }
  func.func @transform_7(%arg0: i32, %arg1: i32, %arg2: i32) -> (i32, i32, i32) {
    %c0_i32 = arith.constant 0 : i32
    %c0_i32_0 = arith.constant 0 : i32
    return %arg0, %c0_i32, %arg1 : i32, i32, i32
  }
}

</mosaic_0001>

<bundles_post_ra>
// kernel: tpu_custom_call.1
= control target key start
LH: loop header
LB: loop body
LE: loop exit
PB: predicated region body
PF: predicated region fallthrough
CT: control target
= control target key end

     0   :  { %s2054_s0 = inlined_call_operand.vmem [shape: f32[2,32,128], index: 0, kind: input, shape index: {}]   ;;  %s2055_s1 = inlined_call_operand.vmem [shape: f32[2,32,128], index: 1, kind: input, shape index: {}]   ;;  %s2056_s2 = inlined_call_operand.vmem [shape: f32[32,32], index: 2, kind: input, shape index: {}]   ;;  %s2057_s3 = inlined_call_operand.vmem [shape: f32[32,1], index: 3, kind: input, shape index: {}]   ;;  %s2058_s4 = inlined_call_operand.vmem [shape: f32[64,32], index: 4, kind: input, shape index: {}]   ;;  %s2059_s5 = inlined_call_operand.vmem [shape: f32[64,1], index: 5, kind: input, shape index: {}]   ;;  %s2060_s6 = inlined_call_operand.<no memory space> [shape: f32[1,1], index: 6, kind: input, shape index: {}]   ;;  %s2061_s7 = inlined_call_operand.hbm [shape: f32[2,32,128], index: 7, kind: output, shape index: {}]  }
   0x1   :  { %12 = sst [smem:[#allocation6]] %s2060_s6 }
   0x2   :  { %13 = vsyncpa [#allocation8], 0 }
   0x3   :  { %15 = vsyncpa [#allocation8 + $0x1], 0  ;;  %s1802_s26 = smov 0   ;;  %s1804_s27 = smov 0  }
   0x4   :  { %s1806_s28 = smov 0   ;;  %s1808_s29 = smov 0  }
   0x5   :  { %s1810_s30 = smov 0   ;;  %s1812_s8 = smov 0  }
   0x6 LB: > { %s1335_s6 = sadd.s32 4294967295, %s1751_s8   ;;  %s1336_s9 = sadd.s32 4294967294, %s1751_s8   ;;  %s1751_s8 = sphi %s1812_s8, %s21_s8   ;;  %s1747_s30 = sphi %s1810_s30, %s2068_s30   ;;  %s1743_s29 = sphi %s1808_s29, %s2067_s29   ;;  %s1739_s28 = sphi %s1806_s28, %s2066_s28   ;;  %s1735_s27 = sphi %s1804_s27, %s2065_s27   ;;  %s1731_s26 = sphi %s1802_s26, %s2064_s26  }
   0x7   : > { %s40_s10 = sadd.s32 1, %s1747_s30  ;;  %s210_s11 = sadd.s32 1, %s1739_s28 }
   0x8   : > { %p42_p0 = scmp.ge.s32.totalorder %s40_s10, 2  ;;  %p220_p1 = scmp.ne.s32.totalorder %s1739_s28, %s1735_s27 }
   0x9   : > { %p221_p2 = scmp.eq.s32.totalorder %s1335_s6, 1  ;;  %p226_p3 = scmp.ne.s32.totalorder %s1735_s27, %s1731_s26 }
   0xa   : > { %s2070_s10 = smov (%p42_p0, %s40_s10), 0  ;;  %p227_p5 = scmp.eq.s32.totalorder %s1336_s9, 1 }
   0xb   : > { %p1842_p4 = por %p221_p2, %p220_p1  ;;  %s205_s13 = ssub.s32 %s1747_s30, %s2070_s10 }
   0xc   : > { %p1339_p6 = scmp.ge.s32.totalorder %s1751_s8, 1  ;;  %p208_p7 = scmp.eq.s32.totalorder %s205_s13, 0 }
   0xd   : > { %p1849_p8 = por %p227_p5, %p226_p3  ;;  %p282_p9 = scmp.lt.s32.totalorder %s1751_s8, 3 }
   0xe   : > { %s1855_s15 = scalar_select %p208_p7, %s1739_s28, %s210_s11  }
   0xf   : > { %p283_p10 = pnand %p1339_p6, %p282_p9 }
  0x10   : > { %p325_p11 = scmp.lt.s32.totalorder (!%p283_p10), %s1743_s29, 1  ;;  %v349_v0 = vld [vmem:[%s2056_s2] sm:$0xff] (!%p283_p10)  ;;  %vm377_vm0 = vcmask (!%p283_p10), 261120   ;;  %v1753_v2 = vmov (!%p283_p10), 0   ;;  %v499_v3 = vld [vmem:[%s2059_s5 + $0x10] sm:$0xff] (!%p283_p10)  ;;  %v500_v5 = vld [vmem:[%s2059_s5 + $0x18] sm:$0xff] (!%p283_p10) }
  0x11   : > { %286 = sbr.rel (%p283_p10) target bundleno = 917 (0x395), region = 48  ;;  %v489_v1 = vld [vmem:[%s2058_s4] sm:$0xff] (!%p283_p10)  ;;  %1449 = vmatprep.mubr.msk.f32.mxu0 (!%p283_p10), %vm377_vm0, %v349_v0  ;;  %1662 = vset.pattern.permute.xlu1 (!%p283_p10), %v1753_v2  ;;  %v498_v18 = vld [vmem:[%s2059_s5 + $0x8] sm:$0xff] (!%p283_p10)  ;;  %v356_v22 = vld [vmem:[%s2057_s3 + $0x18] sm:$0xff] (!%p283_p10)  ;;  %s1207_s16 = sld [smem:[#allocation6]] (!%p283_p10) }
  0x12   : > { %1463 = vmatprep.mubr.msk.f32.mxu1 (!%p283_p10), %vm377_vm0, %v489_v1  ;;  %1661 = vset.pattern.permute.xlu0 (!%p283_p10), %v1753_v2  ;;  %v497_v4 = vld [vmem:[%s2059_s5] sm:$0xff] (!%p283_p10)  ;;  %v354_v19 = vld [vmem:[%s2057_s3 + $0x8] sm:$0xff] (!%p283_p10)  ;;  %v351_v24 = vld [vmem:[%s2056_s2 + $0x10] sm:$0xff] (!%p283_p10)  ;;  %s1380_s19 = sshll.u32 (!%p283_p10), %s1743_s29, 9  ;;  %s1756_s6 = smov (!%p283_p10), [#allocation7]  }
  0x13   : > { %517 = vperm.xlu1 (!%p283_p10), %1662, %v499_v3   ;;  %507 = vperm.xlu0 (!%p283_p10), %1661, %v497_v4   ;;  %v353_v20 = vld [vmem:[%s2057_s3] sm:$0xff] (!%p283_p10)  ;;  %v350_v21 = vld [vmem:[%s2056_s2 + $0x8] sm:$0xff] (!%p283_p10)  ;;  %v491_v25 = vld [vmem:[%s2058_s4 + $0x10] sm:$0xff] (!%p283_p10)  ;;  %s2001_s24 = scalar_lea.hbm (!%p283_p10), %s2061_s7, %s1380_s19  ;;  %s1677_s9 = sshll.u32 (!%p283_p10), %s1756_s6, 4  ;;  %s1678_s9 = int_to_ptr.vmem [resolvable:$false] %s1677_s9 }
  0x14   : > { %v490_v23 = vld [vmem:[%s2058_s4 + $0x8] sm:$0xff] (!%p283_p10)  ;;  %v355_v26 = vld [vmem:[%s2057_s3 + $0x10] sm:$0xff] (!%p283_p10)  ;;  %v352_v27 = vld [vmem:[%s2056_s2 + $0x18] sm:$0xff] (!%p283_p10) }
  0x15   : > { %v501_v28 = vld [vmem:[%s2059_s5 + $0x20] sm:$0xff] (!%p283_p10)  ;;  %v492_v29 = vld [vmem:[%s2058_s4 + $0x18] sm:$0xff] (!%p283_p10)  ;;  %v502_v31 = vld [vmem:[%s2059_s5 + $0x28] sm:$0xff] (!%p283_p10) }
  0x16   : > { %v493_v30 = vld [vmem:[%s2058_s4 + $0x20] sm:$0xff] (!%p283_p10)  ;;  %v494_v32 = vld [vmem:[%s2058_s4 + $0x28] sm:$0xff] (!%p283_p10)  ;;  %v495_v33 = vld [vmem:[%s2058_s4 + $0x30] sm:$0xff] (!%p283_p10) }
  0x17   : > { %522 = vperm.xlu1 (!%p283_p10), %1662, %v500_v5   ;;  %512 = vperm.xlu0 (!%p283_p10), %1661, %v498_v18   ;;  %v503_v34 = vld [vmem:[%s2059_s5 + $0x30] sm:$0xff] (!%p283_p10)  ;;  %v496_v35 = vld [vmem:[%s2058_s4 + $0x38] sm:$0xff] (!%p283_p10) }
  0x18   : > { %s326_s20 = scalar_select %p325_p11, %s1743_s29, 1  ;;  %v504_v36 = vld [vmem:[%s2059_s5 + $0x38] sm:$0xff] }
  0x1a   : > { %s1378_s21 = sshll.u32 %s326_s20, 5 }
  0x1b   : > { %s332_s11 = scalar_lea.vmem %s2054_s0, %s1378_s21  ;;  %s340_s17 = scalar_lea.vmem %s2055_s1, %s1378_s21  ;;  %364 = vperm.xlu1 %1662, %v354_v19   ;;  %359 = vperm.xlu0 %1661, %v353_v20  }
  0x1c   : > { %v1882_v6 = vld [vmem:[%s332_s11] sm:$0xff]  ;;  %v1884_v7 = vld [vmem:[%s332_s11 + $0x8] sm:$0xff]  ;;  %v1888_v11 = vld [vmem:[%s332_s11 + $0x10] sm:$0xff] }
  0x1d   : > { %v485_v8 = vld [vmem:[%s340_s17] sm:$0xff]  ;;  %v1545_v9 = vpack.c.bf16 %v1884_v7, %v1882_v6  ;;  %v486_v10 = vld [vmem:[%s340_s17 + $0x8] sm:$0xff]  ;;  %v1890_v12 = vld [vmem:[%s332_s11 + $0x18] sm:$0xff]  ;;  %s1679_s11 = scalar_lea.vmem %s1678_s9, 1024 }
  0x1e   : > { %v1553_v13 = vpack.c.bf16 %v486_v10, %v485_v8  ;;  %v1549_v14 = vpack.c.bf16 %v1890_v12, %v1888_v11  ;;  %v487_v15 = vld [vmem:[%s340_s17 + $0x10] sm:$0xff]  ;;  %v488_v16 = vld [vmem:[%s340_s17 + $0x18] sm:$0xff]  ;;  %v1755_v10 = vmov 0.0   ;;  %s322_s17 = sand.u32 1, %s1735_s27  }
  0x1f   : > { %1546 = vmatprep.subr.bf16.mxu0 %v1545_v9  ;;  %v1557_v17 = vpack.c.bf16 %v488_v16, %v487_v15  ;;  %374 = vperm.xlu1 %1662, %v356_v22   ;;  %480 = vst [vmem:[#allocation4] sm:$0x1] %v1755_v10  ;;  %s1340_s18 = sshll.u32 %s322_s17, 5  ;;  %s2008_s29 = scalar_lea.sflag [#allocation8], %s322_s17 }
  0x20   : > { %1554 = vmatprep.subr.bf16.mxu1 %v1553_v13  ;;  %1548 = vmatpush3.bf16.msra.mxu0 %v1545_v9  ;;  %v1754_v9 = vmov -1e+30   ;;  %s324_s20 = scalar_lea.vmem [#allocation7], %s1340_s18 }
  0x21   : > { %1556 = vmatpush3.bf16.msra.mxu1 %v1553_v13  ;;  %1550 = vmatprep.subr.bf16.mxu0 %v1549_v14  ;;  %479 = vst [vmem:[#allocation3] sm:$0x1] %v1754_v9  ;;  %s1236_s21 = sshll.u32 %s324_s20, 4  ;;  %s2003_s21 = int_to_ptr.vmem [resolvable:$true] %s1236_s21 }
  0x22   : > { %1558 = vmatprep.subr.bf16.mxu1 %v1557_v17  ;;  %369 = vperm.xlu0 %1661, %v355_v26   ;;  %s1673_s25 = scalar_lea.vmem %s2003_s21, 512  ;;  %p1680_p1 = scmp.lt.s32.totalorder %s2003_s21, %s1678_s9 }
  0x23   : > { %527 = vperm.xlu1 %1662, %v501_v28   ;;  %p1674_p12 = scmp.ne.s32.totalorder %s2003_s21, %s1673_s25  ;;  %p1681_p2 = scmp.lt.s32.totalorder %s1679_s11, %s1673_s25 }
  0x24   : > { %1552 = vmatpush3.bf16.msra.mxu0 %v1549_v14 }
  0x25   : > { %1560 = vmatpush3.bf16.msra.mxu1 %v1557_v17  ;;  %p1675_p13 = pnand %p1674_p12, %p1842_p4  ;;  %p1682_p3 = por %p1681_p2, %p1680_p1 }
  0x27   : > { %1450 = vmatmul.mubr.msk.f32.vlgmr.msra.gmra.mrb[0].mxu0 %vm377_vm0, %v350_v21  ;;  %532 = vperm.xlu1 %1662, %v502_v31   ;;  %p1676_p0 = pneg %p1675_p13 }
  0x28   : > { %1464 = vmatmul.mubr.msk.f32.vlgmr.msra.gmra.mrb[0].mxu1 %vm377_vm0, %v490_v23  ;;  %1452 = vmatprep.mubr.msk.f32.mxu0 %vm377_vm0, %v351_v24 }
  0x29   : > { %1466 = vmatprep.mubr.msk.f32.mxu1 %vm377_vm0, %v491_v25  ;;  %p1683_p5 = pnand %p1682_p3, %p1676_p0 }
  0x2b   : > { %1453 = vmatmul.mubr.msk.f32.gmra.mrb[2].mxu0 %vm377_vm0, %v352_v27  ;;  %537 = vperm.xlu1 %1662, %v503_v34  }
  0x2c   : > { %1467 = vmatmul.mubr.msk.f32.gmra.mrb[2].mxu1 %vm377_vm0, %v492_v29 }
  0x2d   : > { %1469 = vmatprep.mubr.msk.f32.mxu1 %vm377_vm0, %v493_v30 }
  0x2f   : > { %542 = vperm.xlu1 %1662, %v504_v36  }
  0x30   : > { %1470 = vmatmul.mubr.msk.f32.gmra.mrb[4].mxu1 %vm377_vm0, %v494_v32 }
  0x31   : > { %1472 = vmatprep.mubr.msk.f32.mxu1 %vm377_vm0, %v495_v33 }
  0x34   : > { %1473 = vmatmul.mubr.msk.f32.gmra.mrb[6].mxu1 %vm377_vm0, %v496_v35 }
  0x92   : > { %v518_v37 = vpop.permute.xlu1 %517  ;;  %v508_v38 = vpop.permute.xlu0 %507 }
  0x96   : > { %v523_v39 = vpop.permute.xlu1 %522  ;;  %v513_v40 = vpop.permute.xlu0 %512 }
  0x9a   : > { %v365_v41 = vpop.permute.xlu1 %364  ;;  %v360_v42 = vpop.permute.xlu0 %359 }
  0x9e   : > { %v375_v49 = vpop.permute.xlu1 %374 }
  0xa1   : > { %v370_v51 = vpop.permute.xlu0 %369 }
  0xa2   : > { %v528_v63 = vpop.permute.xlu1 %527 }
  0xfa   : > { %v1451_v43 = vpop.f32.mrb[0].mxu0 }
  0xfb   : > { %v462_v44 = vadd.f32 %v1451_v43, %v365_v41  ;;  %v1465_v45 = vpop.f32.mrb[0].mxu1  ;;  %v456_v46 = vpop.f32.mrb[1].mxu0 }
  0xfc   : > { %v457_v47 = vadd.f32 %v456_v46, %v360_v42  ;;  %v636_v48 = vpop.f32.mrb[1].mxu1  ;;  %v642_v59 = vadd.f32 %v1465_v45, %v513_v40 }
  0xfd   : > { %v637_v50 = vadd.f32 %v636_v48, %v508_v38 }
  0xfe   : > { %v1561_v52 = vpack.c.bf16 %v462_v44, %v457_v47  ;;  %v1454_v53 = vpop.f32.mrb[2].mxu0  ;;  %v971_v44 = vld [vmem:[#allocation3] sm:$0x1] }
  0xff   : > { %679 = vxpose.xlu0.b32.start [1/4] (short) %v637_v50, 128  ;;  %v472_v54 = vadd.f32 %v1454_v53, %v375_v49  ;;  %v466_v55 = vpop.f32.mrb[3].mxu0  ;;  %v1468_v56 = vpop.f32.mrb[2].mxu1 }
 0x100   : > { %v467_v57 = vadd.f32 %v466_v55, %v370_v51  ;;  %1562 = vmatprep.subr.bf16.mxu0 %v1561_v52  ;;  %v646_v58 = vpop.f32.mrb[3].mxu1  ;;  %v652_v4 = vadd.f32 %v1468_v56, %v523_v39  ;;  %v998_v39 = vlaneseq }
 0x101   : > { %1564 = vmatpush3.bf16.msra.mxu0 %v1561_v52  ;;  %v647_v61 = vadd.f32 %v646_v58, %v518_v37 }
 0x102   : > { %v1565_v60 = vpack.c.bf16 %v472_v54, %v467_v57  ;;  %v999_v42 = vshrl.u32 %v998_v39, 7 }
 0x103   : > { %v1961_v62 = vpop.f32.mrb[4].mxu1  ;;  %680 = vxpose.xlu0.b32.cont [2/4] (short) %v642_v59, 128 }
 0x104   : > { %v656_v0 = vpop.f32.mrb[5].mxu1  ;;  %1566 = vmatprep.subr.bf16.mxu0 %v1565_v60  ;;  %v1983_v46 = vsub.s32 0, %v999_v42 }
 0x105   : > { %v657_v1 = vadd.f32 %v656_v0, %v528_v63  ;;  %1568 = vmatpush3.bf16.msra.mxu0 %v1565_v60 }
 0x107   : > { %v1963_v2 = vpop.f32.mrb[6].mxu1  ;;  %1539 = vmatprep.mubr.f32.mxu1 %v657_v1  ;;  %681 = vxpose.xlu0.b32.cont [3/4] (short) %v647_v61, 128 }
 0x108   : > { %v1965_v3 = vpop.f32.mrb[7].mxu1 }
 0x10b   : > { %682 = vxpose.xlu0.b32.end [4/4] (short) %v652_v4, 128 }
 0x17f   : > { %v695_v5 = vpop.trf.xlu0 }
 0x180   : > { %1483 = vmatprep.mubr.msk.f32.mxu0 %vm377_vm0, %v695_v5 }
 0x183   : > { %v696_v8 = vpop.trf.xlu0 }
 0x184   : > { %1484 = vmatmul.mubr.msk.f32.vlgmr.msra.gmra.mrb[4].mxu0 %vm377_vm0, %v696_v8 }
 0x187   : > { %v697_v13 = vpop.trf.xlu0 }
 0x188   : > { %1486 = vmatprep.mubr.msk.f32.mxu0 %vm377_vm0, %v697_v13 }
 0x18b   : > { %v698_v14 = vpop.trf.xlu0 }
 0x18c   : > { %1487 = vmatmul.mubr.msk.f32.gmra.mrb[6].mxu0 %vm377_vm0, %v698_v14 }
 0x18f   : > { %v699_v15 = vpop.trf.xlu0 }
 0x190   : > { %1489 = vmatprep.mubr.msk.f32.mxu0 %vm377_vm0, %v699_v15 }
 0x193   : > { %v700_v16 = vpop.trf.xlu0 }
 0x194   : > { %1490 = vmatmul.mubr.msk.f32.gmra.mrb[8].mxu0 %vm377_vm0, %v700_v16  ;;  %v533_v16 = vpop.permute.xlu1 %532 }
 0x197   : > { %v701_v17 = vpop.trf.xlu0 }
 0x198   : > { %1492 = vmatprep.mubr.msk.f32.mxu0 %vm377_vm0, %v701_v17 }
 0x19b   : > { %v702_v18 = vpop.trf.xlu0 }
 0x19c   : > { %1493 = vmatmul.mubr.msk.f32.gmra.mrb[10].mxu0 %vm377_vm0, %v702_v18 }
 0x19f   : > { %v703_v19 = vpop.trf.xlu0 }
 0x1a0   : > { %1495 = vmatprep.mubr.msk.f32.mxu0 %vm377_vm0, %v703_v19 }
 0x1a3   : > { %v704_v20 = vpop.trf.xlu0 }
 0x1a4   : > { %1496 = vmatmul.mubr.msk.f32.gmra.mrb[12].mxu0 %vm377_vm0, %v704_v20 }
 0x1a7   : > { %v705_v21 = vpop.trf.xlu0 }
 0x1a8   : > { %1498 = vmatprep.mubr.msk.f32.mxu0 %vm377_vm0, %v705_v21  ;;  %v538_v21 = vpop.permute.xlu1 %537 }
 0x1ab   : > { %v706_v22 = vpop.trf.xlu0 }
 0x1ac   : > { %1499 = vmatmul.mubr.msk.f32.gmra.mrb[14].mxu0 %vm377_vm0, %v706_v22 }
 0x1af   : > { %v707_v23 = vpop.trf.xlu0 }
 0x1b0   : > { %1501 = vmatprep.mubr.msk.f32.mxu0 %vm377_vm0, %v707_v23  ;;  %v662_v23 = vadd.f32 %v1961_v62, %v533_v16 }
 0x1b3   : > { %v708_v24 = vpop.trf.xlu0 }
 0x1b4   : > { %1502 = vmatmul.mubr.msk.f32.gmra.mrb[16].mxu0 %vm377_vm0, %v708_v24 }
 0x1b7   : > { %v709_v25 = vpop.trf.xlu0 }
 0x1b8   : > { %1504 = vmatprep.mubr.msk.f32.mxu0 %vm377_vm0, %v709_v25  ;;  %v667_v25 = vadd.f32 %v1965_v3, %v538_v21 }
 0x1bb   : > { %v710_v26 = vpop.trf.xlu0 }
 0x1bc   : > { %1505 = vmatmul.mubr.msk.f32.gmra.mrb[18].mxu0 %vm377_vm0, %v710_v26 }
 0x257   : > { %v1485_v27 = vpop.f32.mrb[4].mxu0 }
 0x258   : > { %v973_v28 = vmax.f32 %v1485_v27, -1e+30  ;;  %v825_v29 = vpop.f32.mrb[5].mxu0 }
 0x259   : > { %v972_v30 = vmax.f32 %v825_v29, -1e+30 }
 0x25a   : > { %v977_v31 = vmax.f32 %v973_v28, -1e+30 }
 0x25b   : > { %v976_v32 = vmax.f32 %v972_v30, -1e+30 }
 0x25c   : > { %v981_v33 = vmax.f32 %v977_v31, -1e+30  ;;  %v1051_v31 = vld [vmem:[#allocation4] sm:$0x1] }
 0x25d   : > { %v980_v34 = vmax.f32 %v976_v32, -1e+30 }
 0x25f   : > { %v984_v35 = vmax.f32 %v980_v34, %v981_v33 }
 0x261   : > { %v986_v36 = vmax.f32 %v984_v35, -1e+30 }
 0x263   : > { %v987_v37 = vrot.slane %v986_v36, 4 }
 0x265   : > { %v988_v38 = vmax.f32 %v986_v36, %v987_v37  ;;  %v1488_v36 = vpop.f32.mrb[6].mxu0 }
 0x266   : > { %v835_v62 = vpop.f32.mrb[7].mxu0 }
 0x267   : > { %v989_v40 = vrot.slane %v988_v38, 2  ;;  %v1491_v37 = vpop.f32.mrb[8].mxu0 }
 0x269   : > { %v990_v41 = vmax.f32 %v988_v38, %v989_v40  ;;  %v845_v38 = vpop.f32.mrb[9].mxu0 }
 0x26b   : > { %v991_v43 = vrot.slane %v990_v41, 1 }
 0x26d   : > { %v992_v45 = vmax.f32 %v990_v41, %v991_v43 }
 0x26f   : > { %v993_v47 = vmax.f32 %v971_v44, %v992_v45  ;;  %v1494_v3 = vpop.f32.mrb[10].mxu0 }
 0x270   : > { %v855_v39 = vpop.f32.mrb[11].mxu0 }
 0x271   : > { %v1001_v48 = vrot.slane %v993_v47, %v1983_v46  ;;  %1183 = vst [vmem:[#allocation3] sm:$0x1] %v993_v47  ;;  %v994_v13 = vsub.f32 %v971_v44, %v993_v47 }
 0x273   : > { %v1003_v49 = vsub.f32 %v825_v29, %v1001_v48  ;;  %v1004_v50 = vsub.f32 %v1485_v27, %v1001_v48  ;;  %v1005_v51 = vsub.f32 -1e+30, %v1001_v48  ;;  %v995_v17 = vmul.f32 1.442695, %v994_v13  ;;  %v543_v27 = vpop.permute.xlu1 %542 }
 0x274   : > { %v672_v28 = vadd.f32 %v1963_v2, %v543_v27 }
 0x275   : > { %v1019_v52 = vmul.f32 1.442695, %v1003_v49  ;;  %v1021_v53 = vmul.f32 1.442695, %v1004_v50  ;;  %v1023_v54 = vmul.f32 1.442695, %v1005_v51 }
 0x277   : > { %1663 = vpow2.f32 %v1019_v52  ;;  %v1497_v40 = vpop.f32.mrb[12].mxu0 }
 0x278   : > { %1665 = vpow2.f32 %v1021_v53  ;;  %v865_v41 = vpop.f32.mrb[13].mxu0 }
 0x279   : > { %1667 = vpow2.f32 %v1023_v54 }
 0x27a   : > { %1669 = vpow2.f32 %v995_v17 }
 0x27f   : > { %v1500_v42 = vpop.f32.mrb[14].mxu0 }
 0x280   : > { %v875_v2 = vpop.f32.mrb[15].mxu0 }
 0x281   : > { %v1664_v55 = vpop.eup %1663 }
 0x282   : > { %v1666_v56 = vpop.eup %1665 }
 0x283   : > { %v1668_v57 = vpop.eup %1667  ;;  %v1053_v58 = vadd.f32 %v1666_v56, %v1664_v55  ;;  %v1569_v59 = vpack.c.bf16 %v1666_v56, %v1664_v55  ;;  %v1208_v56 = vstv %s1207_s16 }
 0x284   : > { %v1573_v61 = vpack.c.bf16 %v1668_v57, %v1668_v57  ;;  %v1670_v30 = vpop.eup %1669 }
 0x285   : > { %v1054_v60 = vadd.f32 %v1668_v57, %v1053_v58  ;;  %1570 = vmatprep.subr.bf16.mxu1 %v1569_v59  ;;  %v1052_v33 = vmul.f32 %v1670_v30, %v1051_v31  ;;  %v1084_v49 = vrot.slane %v1670_v30, %v1983_v46 }
 0x286   : > { %1572 = vmatpush3.bf16.msra.mxu1 %v1569_v59 }
 0x287   : > { %v1055_v63 = vadd.f32 %v1668_v57, %v1054_v60  ;;  %1574 = vmatprep.subr.bf16.mxu1 %v1573_v61  ;;  %v1503_v43 = vpop.f32.mrb[16].mxu0  ;;  %v1086_v51 = vmul.f32 0.0, %v1084_v49 }
 0x288   : > { %v885_v44 = vpop.f32.mrb[17].mxu0 }
 0x289   : > { %v1056_v0 = vadd.f32 %v1668_v57, %v1055_v63 }
 0x28a   : > { %1576 = vmatpush3.bf16.msra.mxu1 %v1573_v61 }
 0x28b   : > { %v1057_v1 = vadd.f32 %v1668_v57, %v1056_v0  ;;  %1578 = vmatprep.subr.bf16.mxu1 %v1573_v61 }
 0x28d   : > { %v1058_v4 = vadd.f32 %v1668_v57, %v1057_v1 }
 0x28e   : > { %1580 = vmatpush3.bf16.msra.mxu1 %v1573_v61 }
 0x28f   : > { %v1059_v5 = vadd.f32 %v1668_v57, %v1058_v4  ;;  %1582 = vmatprep.subr.bf16.mxu1 %v1573_v61  ;;  %v1506_v45 = vpop.f32.mrb[18].mxu0 }
 0x290   : > { %v895_v47 = vpop.f32.mrb[19].mxu0 }
 0x291   : > { %v1060_v8 = vadd.f32 %v1668_v57, %v1059_v5 }
 0x292   : > { %1584 = vmatpush3.bf16.msra.mxu1 %v1573_v61 }
 0x293   : > { %v1061_v9 = vadd.f32 %v1668_v57, %v1060_v8  ;;  %1586 = vmatprep.subr.bf16.mxu1 %v1573_v61 }
 0x295   : > { %v1062_v10 = vadd.f32 %v1668_v57, %v1061_v9 }
 0x296   : > { %1588 = vmatpush3.bf16.msra.mxu1 %v1573_v61 }
 0x297   : > { %v1063_v14 = vadd.f32 %v1668_v57, %v1062_v10  ;;  %1590 = vmatprep.subr.bf16.mxu1 %v1573_v61 }
 0x299   : > { %v1064_v15 = vadd.f32 %v1668_v57, %v1063_v14 }
 0x29a   : > { %1592 = vmatpush3.bf16.msra.mxu1 %v1573_v61 }
 0x29b   : > { %v1065_v18 = vadd.f32 %v1668_v57, %v1064_v15  ;;  %1594 = vmatprep.subr.bf16.mxu1 %v1573_v61 }
 0x29d   : > { %v1066_v19 = vadd.f32 %v1668_v57, %v1065_v18 }
 0x29e   : > { %1596 = vmatpush3.bf16.msra.mxu1 %v1573_v61 }
 0x29f   : > { %v1067_v20 = vadd.f32 %v1668_v57, %v1066_v19  ;;  %1598 = vmatprep.subr.bf16.mxu1 %v1573_v61 }
 0x2a1   : > { %v1068_v22 = vrot.slane %v1067_v20, 4 }
 0x2a2   : > { %1600 = vmatpush3.bf16.msra.mxu1 %v1573_v61 }
 0x2a3   : > { %v1069_v24 = vadd.f32 %v1068_v22, %v1067_v20 }
 0x2a5   : > { %v1070_v26 = vrot.slane %v1069_v24, 2  ;;  %1540 = vmatmul.mubr.f32.vlgmr.msra.gmra.mrb[8].mxu1 %v662_v23 }
 0x2a6   : > { %1542 = vmatprep.mubr.f32.mxu1 %v667_v25 }
 0x2a7   : > { %v1071_v29 = vadd.f32 %v1070_v26, %v1069_v24 }
 0x2a9   : > { %v1072_v32 = vrot.slane %v1071_v29, 1  ;;  %1543 = vmatmul.mubr.f32.gmra.mrb[10].mxu1 %v672_v28 }
 0x2ab   : > { %v1073_v34 = vadd.f32 %v1072_v32, %v1071_v29 }
 0x2ad   : > { %v1074_v35 = vadd.f32 %v1073_v34, %v1052_v33 }
 0x2af   : > { %1075 = vst [vmem:[#allocation4] sm:$0x1] %v1074_v35 }
 0x2b6   : > { %v1187_v48 = vld [vmem:[#allocation4] sm:$0x1] }
 0x2b7   : > { %1671 = vrcp.f32 %v1187_v48 }
 0x2c1   : > { %v1672_v50 = vpop.eup %1671 }
 0x2c2   : > { %v1197_v54 = vrot.slane %v1672_v50, %v1983_v46 }
 0x378   : > { %v1541_v52 = vpop.f32.mrb[8].mxu1 }
 0x379   : > { %v1176_v53 = vadd.f32 %v1541_v52, %v1086_v51  ;;  %v1156_v55 = vpop.f32.mrb[9].mxu1 }
 0x37a   : > { %v1175_v57 = vadd.f32 %v1156_v55, %v1086_v51 }
 0x37b   : > { %v1200_v58 = vmul.f32 %v1197_v54, %v1176_v53 }
 0x37c   : > { %v1199_v59 = vmul.f32 %v1197_v54, %v1175_v57  ;;  %v1544_v60 = vpop.f32.mrb[10].mxu1 }
 0x37d   : > { %v1210_v61 = vmul.f32 %v1208_v56, %v1200_v58  ;;  %v1178_v63 = vadd.f32 %v1544_v60, %v1086_v51  ;;  %v1166_v0 = vpop.f32.mrb[11].mxu1 }
 0x37e   : > { %v1209_v1 = vmul.f32 %v1208_v56, %v1199_v59  ;;  %v1177_v4 = vadd.f32 %v1166_v0, %v1086_v51 }
 0x37f   : > { %v1214_v5 = vadd.f32 %v1210_v61, %v1884_v7  ;;  %v1202_v8 = vmul.f32 %v1197_v54, %v1178_v63 }
 0x380   : > { %v1213_v46 = vadd.f32 %v1209_v1, %v1882_v6  ;;  %v1201_v9 = vmul.f32 %v1197_v54, %v1177_v4 }
 0x381   : > { %1218 = vst [vmem:[%s324_s20 + $0x8] sm:$0xff] %v1214_v5  ;;  %v1212_v10 = vmul.f32 %v1208_v56, %v1202_v8 }
 0x382   : > { %1217 = vst [vmem:[%s324_s20] sm:$0xff] %v1213_v46  ;;  %v1211_v13 = vmul.f32 %v1208_v56, %v1201_v9 }
 0x383   : > { %v1216_v14 = vadd.f32 %v1212_v10, %v1890_v12 }
 0x384   : > { %v1215_v6 = vadd.f32 %v1211_v13, %v1888_v11 }
 0x385   : > { %1220 = vst [vmem:[%s324_s20 + $0x18] sm:$0xff] %v1216_v14 }
 0x386   : > { %1219 = vst [vmem:[%s324_s20 + $0x10] sm:$0xff] %v1215_v6 }
 0x387   : > { %1686 = shalt.err (!%p1683_p5)
}
 0x388   : > { %s1687_s13 = scalar_lea.hbm %s2001_s24, 512  ;;  %s1691_s18 = scalar_lea.hbm %s2061_s7, 1024 }
 0x389   : > { %p1688_p6 = scmp.ne.s32.totalorder %s2001_s24, %s1687_s13  ;;  %p1692_p10 = scmp.lt.u32.totalorder %s2001_s24, %s2061_s7 }
 0x38a   : > { %p1693_p11 = scmp.lt.u32.totalorder %s1691_s18, %s1687_s13  ;;  %p1695_p13 = scmp.lt.u32.totalorder %s1687_s13, %s2001_s24 }
 0x38b   : > { %p1689_p7 = pnand %p1688_p6, %p1842_p4 }
 0x38c   : > { %p1694_p12 = por %p1693_p11, %p1692_p10 }
 0x38d   : > { %p1690_p9 = pneg %p1689_p7 }
 0x38e   : > { %p1696_p0 = por %p1695_p13, %p1694_p12 }
 0x390   : > { %p1697_p1 = pnand %p1696_p0, %p1690_p9 }
 0x392   : > { %1700 = shalt.err (!%p1697_p1)
}
 0x393   : > { %s1757_s22 = smov 128   ;;  %s1758_s23 = smov 8  }
 0x394   : > { %1601 = dma.vmem_to_hbm [thread:$0]  (%p1842_p4), %s2003_s21, 512, %s2001_s24, %s2008_s29, %s1757_s22, %s1757_s22, %s1758_s23  }
 0x395 PF: > { %p1607_p2 = scmp.ge.s32.totalorder %s1751_s8, 2  ;;  %s1251_s25 = sand.u32 1, %s1731_s26  }
 0x396   : > { %s1252_s6 = scalar_lea.sflag [#allocation8], %s1251_s25 }
 0x397   : > { %p1604_p3 = pnand %p1607_p2, %p1849_p8 }
 0x399   : > { %1726 = dma.done.wait (!%p1604_p3), %s1252_s6, 512  }
 0x39a   : > { %1728 = vsyncadd (!%p1604_p3), %s1252_s6, 4294966784  ;;  %s21_s8 = sadd.s32 1, %s1751_s8   ;;  %s2064_s26 = smov %s1735_s27 }
 0x39b   : > { %p18_p5 = scmp.ge.s32.totalorder %s21_s8, 4   ;;  %s2065_s27 = smov %s1739_s28 }
 0x39c   : > { %s2066_s28 = smov %s1855_s15  ;;  %s2067_s29 = smov %s1747_s30 }
 0x39d   : > { %s2068_s30 = smov %s2070_s10  ;;  %20 = sbr.rel (!%p18_p5) target bundleno = 6 (0x6), region = 94 }
 0x3a4   :  { %1257 = vsyncpa [#allocation8], 1 }
 0x3a5   :  { %1259 = vsyncpa [#allocation8 + $0x1], 1 }

</bundles_post_ra>
